<compile_context>
chip_gen: v5e
topology: v5e:2x2
jax: 0.10.0
libtpu: 0.0.40
codegen_flags: <defaults>
</compile_context>

<pallas_src>
import math

import jax
import jax.numpy as jnp
from jax.experimental import pallas as pl
from jax.experimental.pallas import tpu as pltpu


def _mlp_head_kernel(x_ref, w1_ref, b1_ref, w2_ref, b2_ref, o_ref):
    # x_ref : [TB, D] f32   (streamed batch tile of the flattened input)
    # w1_ref: [D, H]  bf16  (resident: constant index_map across grid steps)
    # b1_ref: [1, H]  f32   (resident)
    # w2_ref: [1, H]  f32   (fc2 weight as a row vector, resident)
    # b2_ref: [1, 1]  f32   (SMEM scalar)
    # o_ref : [1, TB] f32   (lane-dense output tile)
    x_bf = x_ref[...].astype(jnp.bfloat16)              # in-kernel cast (VPU slack)
    h = jnp.dot(x_bf, w1_ref[...], preferred_element_type=jnp.float32)   # [TB, H]
    h = jnp.maximum(h + b1_ref[...], 0.0)                # fc1 bias + ReLU (f32)
    # fc2 has N=1: contract H so the result lands lane-major as (1, TB) -- no
    # XLU lane-reduce, full-lane-width sigmoid, unmasked stores.
    z = jax.lax.dot_general(w2_ref[...], h, (((1,), (1,)), ((), ())),
                            preferred_element_type=jnp.float32)          # [1, TB]
    o_ref[...] = jax.nn.sigmoid(z + b2_ref[0, 0])         # fc2 bias + sigmoid (f32)


def _vmem_budget_bytes():
    """Generation-aware VMEM budget and explicit mosaic limit (or None)."""
    try:
        cap = int(pltpu.get_tpu_info().vmem_capacity_bytes)
    except Exception:
        # Unknown chip: stay under v5e's 16 MiB default scoped limit and do not
        # force an explicit limit.
        return 16 * 1024 * 1024, None
    budget = (cap * 3) // 4            # headroom for compiler-internal scratch
    return budget, budget


def _choose_batch_tile(B, D, H, budget_bytes):
    """Pick the batch tile TB.

    Constraints:
      * pipeline footprint (2x f32 x tile + resident w1/b1/w2 + h intermediate
        + output buffers) fits the VMEM budget,
      * TB is a multiple of 128 when the grid has >1 step (lane-dense (1, TB)
        output block), a multiple of 8 otherwise,
      * >= 4 grid steps for large B so both v7x TensorCores get work.
    """
    per_row = 2 * D * 4 + H * 4 + 2 * 4          # x (2 bufs) + h + out (2 bufs)
    resident = 2 * D * H * 2 + 4 * H * 4          # w1 bf16 (2 bufs) + b1/w2 rows
    avail = max(budget_bytes - resident, per_row * 8)
    tb_cap = max(8, avail // per_row)
    tb_dma = max(128, (4 * 1024 * 1024) // (D * 4))   # ~4 MiB per x DMA buffer
    b_pad8 = -(-B // 8) * 8

    if B < 4 * 128 and b_pad8 <= min(tb_cap, tb_dma):
        return b_pad8                              # tiny batch: one tile, grid of 1
    tb = min(tb_cap, tb_dma, max(128, b_pad8 // 4))
    return max(128, (tb // 128) * 128)


def cnn_consequent_forward(x_nchw, w1, b1, w2, b2):
    """x_nchw: [B, ...] f32 -> [B, 1] f32 (flatten -> fc1 -> ReLU -> fc2 -> sigmoid)."""
    B = x_nchw.shape[0]
    D = int(math.prod(x_nchw.shape[1:]))           # self._to_linear
    H = w1.shape[1]                                 # hidden width (128)

    x2d = x_nchw.reshape(B, D)                      # x.view(-1, _to_linear); stays f32

    # Small / resident operands prepared once in the wrapper (negligible traffic).
    w1_bf = w1.astype(jnp.bfloat16)                 # [D, H]
    b1_row = b1.reshape(1, H).astype(jnp.float32)
    w2_row = w2.reshape(1, H).astype(jnp.float32)   # fc2 weight [H,1] -> row [1,H]
    b2_s = b2.reshape(1, 1).astype(jnp.float32)

    budget, vmem_limit = _vmem_budget_bytes()
    TB = _choose_batch_tile(B, D, H, budget)

    if B < TB:
        # Tiny single-tile batch: pad a handful of rows (<= 7 typical) so the
        # (TB, D) block never exceeds the array extent.  The large-B path never
        # pads and streams x unchanged (ragged tail handled by cdiv grid).
        x2d = jnp.pad(x2d, ((0, TB - B), (0, 0)))

    G = pl.cdiv(max(B, TB), TB)                     # ragged tail: no input padding

    cost = pl.CostEstimate(
        flops=2 * G * TB * D * H + 2 * G * TB * H,
        transcendentals=G * TB,                     # exp inside sigmoid, per row
        bytes_accessed=B * D * 4 + D * H * 2 + 2 * H * 4 + 4 + G * TB * 4,
    )

    out = pl.pallas_call(
        _mlp_head_kernel,
        out_shape=jax.ShapeDtypeStruct((1, G * TB), jnp.float32),
        grid=(G,),
        in_specs=[
            pl.BlockSpec((TB, D), lambda i: (i, 0)),            # x: streamed f32 tiles
            pl.BlockSpec((D, H), lambda i: (0, 0)),             # w1: VMEM resident
            pl.BlockSpec((1, H), lambda i: (0, 0)),             # b1: resident
            pl.BlockSpec((1, H), lambda i: (0, 0)),             # w2 row: resident
            pl.BlockSpec(memory_space=pltpu.MemorySpace.SMEM),  # b2: SMEM scalar
        ],
        out_specs=pl.BlockSpec((1, TB), lambda i: (0, i)),       # lane-dense output
        compiler_params=pltpu.CompilerParams(
            dimension_semantics=("parallel",),                   # dual-TC on v7x
            vmem_limit_bytes=vmem_limit,
        ),
        cost_estimate=cost,
    )(x2d, w1_bf, b1_row, w2_row, b2_s)

    return out.reshape(-1)[:B].reshape(B, 1)


def _reference(x_nchw, w1, b1, w2, b2):
    """Pure-JAX reference with the same bf16 casts (for parity checking)."""
    B = x_nchw.shape[0]
    D = int(math.prod(x_nchw.shape[1:]))
    x = x_nchw.reshape(B, D).astype(jnp.bfloat16)
    h = jnp.dot(x, w1.astype(jnp.bfloat16), preferred_element_type=jnp.float32)
    h = jnp.maximum(h + b1.reshape(1, -1).astype(jnp.float32), 0.0)
    z = h @ w2.astype(jnp.float32) + b2.astype(jnp.float32)
    return jax.nn.sigmoid(z)


def init_params(key, d_in, d_hidden=128, d_out=1):
    """Deterministic init mimicking nn.Linear default (uniform +-1/sqrt(fan_in))."""
    k1, k2, k3, k4 = jax.random.split(key, 4)
    lim1 = 1.0 / math.sqrt(d_in)
    lim2 = 1.0 / math.sqrt(d_hidden)
    w1 = jax.random.uniform(k1, (d_in, d_hidden), jnp.float32, -lim1, lim1)
    b1 = jax.random.uniform(k2, (d_hidden,), jnp.float32, -lim1, lim1)
    w2 = jax.random.uniform(k3, (d_hidden, d_out), jnp.float32, -lim2, lim2)
    b2 = jax.random.uniform(k4, (d_out,), jnp.float32, -lim2, lim2)
    return w1, b1, w2, b2


if __name__ == "__main__":
    key = jax.random.PRNGKey(0)
    kx, kp = jax.random.split(key)

    # NCHW consistent with the module's Conv2d(in_channels=2, ...):
    # [batch=2, channels=2, H=16, W=16] -> _to_linear = 2*16*16 = 512
    B, C, Hh, Ww = 2, 2, 16, 16
    x = jax.random.normal(kx, (B, C, Hh, Ww), jnp.float32)

    D = C * Hh * Ww
    w1, b1, w2, b2 = init_params(kp, D)

    y = jax.block_until_ready(cnn_consequent_forward(x, w1, b1, w2, b2))

    assert y.shape == (B, 1) and y.dtype == jnp.float32
    y_ref = jax.block_until_ready(_reference(x, w1, b1, w2, b2))
    assert bool(jnp.all(jnp.isfinite(y)))
    assert jnp.allclose(y, y_ref, atol=5e-3, rtol=5e-3)
    print("KERNEL_OK")
</pallas_src>

<mosaic_0001>
module attributes {stable_mosaic.version = 11 : i64} {
  func.func @_mlp_head_kernel(%arg0: i32, %arg1: memref<8x512xf32, #tpu.memory_space<vmem>>, %arg2: memref<512x128xbf16, #tpu.memory_space<vmem>>, %arg3: memref<1x128xf32, #tpu.memory_space<vmem>>, %arg4: memref<1x128xf32, #tpu.memory_space<vmem>>, %arg5: memref<1x1xf32, #tpu.memory_space<smem>>, %arg6: memref<1x8xf32, #tpu.memory_space<vmem>>) attributes {dimension_semantics = [#tpu.dimension_semantics<parallel>], iteration_bounds = array<i64: 1>, scalar_prefetch = 0 : i64, scratch_operands = 0 : i64, tpu.core_type = #tpu.core_type<tc>, window_params = [{transform_indices = @transform_0, window_bounds = array<i64: 8, 512>}, {pipeline_mode = #tpu.pipeline_mode<synchronous>, transform_indices = @transform_1, window_bounds = array<i64: 512, 128>}, {pipeline_mode = #tpu.pipeline_mode<synchronous>, transform_indices = @transform_2, window_bounds = array<i64: 1, 128>}, {pipeline_mode = #tpu.pipeline_mode<synchronous>, transform_indices = @transform_3, window_bounds = array<i64: 1, 128>}, {transform_indices = @transform_4, window_bounds = array<i64: 1, 1>}, {transform_indices = @transform_5, window_bounds = array<i64: 1, 8>}]} {
    %c0 = arith.constant 0 : index
    %c0_0 = arith.constant 0 : index
    %0 = vector.load %arg1[%c0, %c0_0] : memref<8x512xf32, #tpu.memory_space<vmem>>, vector<8x512xf32>
    %1 = arith.truncf %0 : vector<8x512xf32> to vector<8x512xbf16>
    %c0_1 = arith.constant 0 : index
    %c0_2 = arith.constant 0 : index
    %2 = vector.load %arg2[%c0_1, %c0_2] : memref<512x128xbf16, #tpu.memory_space<vmem>>, vector<512x128xbf16>
    %cst = arith.constant dense<0.000000e+00> : vector<8x128xf32>
    %3 = tpu.matmul %1, %2, %cst {dimension_numbers = #tpu.dot_dimension_numbers<[1], [0], [0], [1], [0, 0, 1, 1], [], []>} : vector<8x512xbf16>, vector<512x128xbf16>, vector<8x128xf32> -> vector<8x128xf32>
    %c0_3 = arith.constant 0 : index
    %c0_4 = arith.constant 0 : index
    %4 = vector.load %arg3[%c0_3, %c0_4] : memref<1x128xf32, #tpu.memory_space<vmem>>, vector<1x128xf32>
    %5 = vector.broadcast %4 : vector<1x128xf32> to vector<8x128xf32>
    %6 = arith.addf %3, %5 : vector<8x128xf32>
    %cst_5 = arith.constant 0.000000e+00 : f32
    %7 = vector.broadcast %cst_5 : f32 to vector<8x128xf32>
    %8 = arith.maximumf %6, %7 : vector<8x128xf32>
    %c0_6 = arith.constant 0 : index
    %c0_7 = arith.constant 0 : index
    %9 = vector.load %arg4[%c0_6, %c0_7] : memref<1x128xf32, #tpu.memory_space<vmem>>, vector<1x128xf32>
    %cst_8 = arith.constant dense<0.000000e+00> : vector<1x8xf32>
    %10 = tpu.matmul %9, %8, %cst_8 {dimension_numbers = #tpu.dot_dimension_numbers<[1], [1], [0], [0], [0, 0, 1, 0], [], []>} : vector<1x128xf32>, vector<8x128xf32>, vector<1x8xf32> -> vector<1x8xf32>
    %c0_9 = arith.constant 0 : index
    %c0_10 = arith.constant 0 : index
    %11 = memref.load %arg5[%c0_9, %c0_10] : memref<1x1xf32, #tpu.memory_space<smem>>
    %12 = vector.broadcast %11 : f32 to vector<1x8xf32>
    %13 = arith.addf %10, %12 : vector<1x8xf32>
    %14 = arith.negf %13 : vector<1x8xf32>
    %15 = math.exp %14 : vector<1x8xf32>
    %cst_11 = arith.constant 1.000000e+00 : f32
    %16 = vector.broadcast %cst_11 : f32 to vector<1x8xf32>
    %17 = arith.addf %16, %15 : vector<1x8xf32>
    %18 = arith.divf %16, %17 : vector<1x8xf32>
    %c0_12 = arith.constant 0 : index
    %c0_13 = arith.constant 0 : index
    %19 = vector.load %arg6[%c0_12, %c0_13] : memref<1x8xf32, #tpu.memory_space<vmem>>, vector<1x8xf32>
    tpu.vector_store %arg6[%c0_12, %c0_13], %18 {strides = array<i32>} : memref<1x8xf32, #tpu.memory_space<vmem>>, vector<1x8xf32>,
    return
  }
  func.func @transform_0(%arg0: i32) -> (i32, i32) {
    %c0_i32 = arith.constant 0 : i32
    %c0_i32_0 = arith.constant 0 : i32
    return %arg0, %c0_i32 : i32, i32
  }
  func.func @transform_1(%arg0: i32) -> (i32, i32) {
    %c0_i32 = arith.constant 0 : i32
    %c0_i32_0 = arith.constant 0 : i32
    %c0_i32_1 = arith.constant 0 : i32
    return %c0_i32, %c0_i32_0 : i32, i32
  }
  func.func @transform_2(%arg0: i32) -> (i32, i32) {
    %c0_i32 = arith.constant 0 : i32
    %c0_i32_0 = arith.constant 0 : i32
    %c0_i32_1 = arith.constant 0 : i32
    return %c0_i32, %c0_i32_0 : i32, i32
  }
  func.func @transform_3(%arg0: i32) -> (i32, i32) {
    %c0_i32 = arith.constant 0 : i32
    %c0_i32_0 = arith.constant 0 : i32
    %c0_i32_1 = arith.constant 0 : i32
    return %c0_i32, %c0_i32_0 : i32, i32
  }
  func.func @transform_4(%arg0: i32) -> (i32, i32) {
    %c0_i32 = arith.constant 0 : i32
    %c0_i32_0 = arith.constant 0 : i32
    %c0_i32_1 = arith.constant 0 : i32
    return %c0_i32, %c0_i32_0 : i32, i32
  }
  func.func @transform_5(%arg0: i32) -> (i32, i32) {
    %c0_i32 = arith.constant 0 : i32
    %c0_i32_0 = arith.constant 0 : i32
    return %c0_i32, %arg0 : i32, i32
  }
}

</mosaic_0001>

<bundles_post_ra>
// kernel: tpu_custom_call.1
= control target key start
LH: loop header
LB: loop body
LE: loop exit
PB: predicated region body
PF: predicated region fallthrough
CT: control target
= control target key end

     0   :  { %11 = vsyncpa [#allocation4], 0  ;;  %s737_s0 = inlined_call_operand.hbm [shape: f32[8,512], index: 0, kind: input, shape index: {}]   ;;  %s738_s1 = inlined_call_operand.hbm [shape: bf16[512,128], index: 1, kind: input, shape index: {}]   ;;  %s739_s2 = inlined_call_operand.vmem [shape: f32[1,128], index: 2, kind: input, shape index: {}]   ;;  %s740_s3 = inlined_call_operand.vmem [shape: f32[1,128], index: 3, kind: input, shape index: {}]   ;;  %s741_s4 = inlined_call_operand.<no memory space> [shape: f32[1,1], index: 4, kind: input, shape index: {}]   ;;  %s742_s5 = inlined_call_operand.hbm [shape: f32[1,8], index: 5, kind: output, shape index: {}]  }
   0x1   :  { %12 = vsyncpa [#allocation7], 0 }
   0x2   :  { %13 = vsyncpa [#allocation5], 0  ;;  %s19_s20 = sshll.u32 %s737_s0, 4  ;;  %s684_s21 = smov [#allocation3]   ;;  %s20_s20 = int_to_ptr.hbm [resolvable:$true] %s19_s20 }
   0x3   :  { %s21_s22 = sshll.u32 %s684_s21, 4  ;;  %s29_s25 = sshll.u32 %s738_s1, 4  ;;  %s22_s22 = int_to_ptr.vmem [resolvable:$true] %s21_s22  ;;  %s30_s25 = int_to_ptr.hbm [resolvable:$true] %s29_s25 }
   0x4   :  { %24 = dma.hbm_to_vmem [thread:$0]  %s20_s20, 512, %s22_s22, [#allocation4]  }
   0x5   :  { %s685_s26 = smov [#allocation6]   ;;  %s686_s28 = smov 64  }
   0x6   :  { %s31_s27 = sshll.u32 %s685_s26, 4  ;;  %s687_s29 = smov 4   ;;  %s32_s27 = int_to_ptr.vmem [resolvable:$true] %s31_s27 }
   0x7   :  { %37 = dma.hbm_to_vmem [thread:$0]  %s30_s25, 4096, %s32_s27, [#allocation7], %s686_s28, %s686_s28, %s687_s29  }
   0x8   :  { %678 = dma.done.wait [#allocation4], 512  }
   0x9   :  { %679 = vsyncadd [#allocation4], 4294966784 }
   0xa   :  { %680 = dma.done.wait [#allocation7], 4096  }
   0xb   :  { %681 = vsyncadd [#allocation7], 4294963200  ;;  %v571_v0 = vld [vmem:[#allocation6 + $0x38] sm:$0xff]  ;;  %v570_v4 = vld [vmem:[#allocation6 + $0x30] sm:$0xff]  ;;  %v375_v55 = vstv %s741_s4  ;;  %s424_s4 = sshll.u32 %s742_s5, 4  ;;  %vm415_vm3 = vcmask 57344   ;;  %s425_s4 = int_to_ptr.hbm [resolvable:$true] %s424_s4 }
   0xc   :  { %v579_v1 = vld [vmem:[#allocation6 + $0x78] sm:$0xff]  ;;  %320 = vmatpush.bf16.msra.mxu0 %v571_v0  ;;  %v578_v5 = vld [vmem:[#allocation6 + $0x70] sm:$0xff]  ;;  %v569_v8 = vld [vmem:[#allocation6 + $0x28] sm:$0xff] }
   0xd   :  { %v587_v2 = vld [vmem:[#allocation6 + $0xb8] sm:$0xff]  ;;  %333 = vmatpush.bf16.msra.mxu1 %v579_v1  ;;  %v586_v6 = vld [vmem:[#allocation6 + $0xb0] sm:$0xff]  ;;  %v577_v9 = vld [vmem:[#allocation6 + $0x68] sm:$0xff] }
   0xe   :  { %v595_v3 = vld [vmem:[#allocation6 + $0xf8] sm:$0xff]  ;;  %346 = vmatpush.bf16.msra.mxu2 %v587_v2  ;;  %v594_v7 = vld [vmem:[#allocation6 + $0xf0] sm:$0xff]  ;;  %v585_v10 = vld [vmem:[#allocation6 + $0xa8] sm:$0xff] }
   0xf   :  { %359 = vmatpush.bf16.msra.mxu3 %v595_v3  ;;  %v593_v11 = vld [vmem:[#allocation6 + $0xe8] sm:$0xff]  ;;  %v568_v12 = vld [vmem:[#allocation6 + $0x20] sm:$0xff]  ;;  %v567_v16 = vld [vmem:[#allocation6 + $0x18] sm:$0xff] }
  0x10   :  { %321 = vmatpush.bf16.msra.mxu0 %v570_v4  ;;  %v576_v13 = vld [vmem:[#allocation6 + $0x60] sm:$0xff]  ;;  %v575_v17 = vld [vmem:[#allocation6 + $0x58] sm:$0xff]  ;;  %v566_v20 = vld [vmem:[#allocation6 + $0x10] sm:$0xff] }
  0x11   :  { %334 = vmatpush.bf16.msra.mxu1 %v578_v5  ;;  %v584_v14 = vld [vmem:[#allocation6 + $0xa0] sm:$0xff]  ;;  %v583_v18 = vld [vmem:[#allocation6 + $0x98] sm:$0xff]  ;;  %v574_v21 = vld [vmem:[#allocation6 + $0x50] sm:$0xff] }
  0x12   :  { %347 = vmatpush.bf16.msra.mxu2 %v586_v6  ;;  %v592_v15 = vld [vmem:[#allocation6 + $0xe0] sm:$0xff]  ;;  %v591_v19 = vld [vmem:[#allocation6 + $0xd8] sm:$0xff]  ;;  %v582_v22 = vld [vmem:[#allocation6 + $0x90] sm:$0xff] }
  0x13   :  { %360 = vmatpush.bf16.msra.mxu3 %v594_v7  ;;  %v590_v23 = vld [vmem:[#allocation6 + $0xd0] sm:$0xff]  ;;  %v565_v24 = vld [vmem:[#allocation6 + $0x8] sm:$0xff]  ;;  %v564_v28 = vld [vmem:[#allocation6] sm:$0xff] }
  0x14   :  { %322 = vmatpush.bf16.msra.mxu0 %v569_v8  ;;  %v573_v25 = vld [vmem:[#allocation6 + $0x48] sm:$0xff]  ;;  %v572_v29 = vld [vmem:[#allocation6 + $0x40] sm:$0xff]  ;;  %v54_v34 = vld [vmem:[#allocation3 + $0x10] sm:$0xff] }
  0x15   :  { %335 = vmatpush.bf16.msra.mxu1 %v577_v9  ;;  %v581_v26 = vld [vmem:[#allocation6 + $0x88] sm:$0xff]  ;;  %v580_v30 = vld [vmem:[#allocation6 + $0x80] sm:$0xff]  ;;  %v55_v35 = vld [vmem:[#allocation3 + $0x18] sm:$0xff]  ;;  %v58_v38 = vpack.c.bf16 %v54_v34, %v54_v34 }
  0x16   :  { %348 = vmatpush.bf16.msra.mxu2 %v585_v10  ;;  %v589_v27 = vld [vmem:[#allocation6 + $0xc8] sm:$0xff]  ;;  %v52_v31 = vld [vmem:[#allocation3] sm:$0xff]  ;;  %v59_v39 = vpack.c.bf16 %v55_v35, %v55_v35 }
  0x17   :  { %361 = vmatpush.bf16.msra.mxu3 %v593_v11  ;;  %v53_v32 = vld [vmem:[#allocation3 + $0x8] sm:$0xff]  ;;  %v588_v33 = vld [vmem:[#allocation6 + $0xc0] sm:$0xff]  ;;  %v56_v36 = vpack.c.bf16 %v52_v31, %v52_v31 }
  0x18   :  { %323 = vmatpush.bf16.msra.mxu0 %v568_v12  ;;  %v57_v37 = vpack.c.bf16 %v53_v32, %v53_v32  ;;  %v601_v40 = vld [vmem:[%s739_s2] ss:$0 sm:$0xff] }
  0x19   :  { %336 = vmatpush.bf16.msra.mxu1 %v576_v13  ;;  %v373_v52 = vld [vmem:[%s740_s3] sm:$0x1]  ;;  %s688_s3 = smov [#allocation8]  }
  0x1a   :  { %349 = vmatpush.bf16.msra.mxu2 %v584_v14  ;;  %s422_s8 = sshll.u32 %s688_s3, 4  ;;  %s423_s8 = int_to_ptr.vmem [resolvable:$true] %s422_s8 }
  0x1b   :  { %362 = vmatpush.bf16.msra.mxu3 %v592_v15 }
  0x1c   :  { %324 = vmatpush.bf16.msra.mxu0 %v567_v16 }
  0x1d   :  { %337 = vmatpush.bf16.msra.mxu1 %v575_v17 }
  0x1e   :  { %350 = vmatpush.bf16.msra.mxu2 %v583_v18 }
  0x1f   :  { %363 = vmatpush.bf16.msra.mxu3 %v591_v19 }
  0x20   :  { %325 = vmatpush.bf16.msra.mxu0 %v566_v20 }
  0x21   :  { %338 = vmatpush.bf16.msra.mxu1 %v574_v21 }
  0x22   :  { %351 = vmatpush.bf16.msra.mxu2 %v582_v22 }
  0x23   :  { %364 = vmatpush.bf16.msra.mxu3 %v590_v23 }
  0x24   :  { %326 = vmatpush.bf16.msra.mxu0 %v565_v24 }
  0x25   :  { %339 = vmatpush.bf16.msra.mxu1 %v573_v25 }
  0x26   :  { %352 = vmatpush.bf16.msra.mxu2 %v581_v26 }
  0x27   :  { %365 = vmatpush.bf16.msra.mxu3 %v589_v27 }
  0x28   :  { %327 = vmatpush.bf16.msra.mxu0 %v564_v28 }
  0x29   :  { %340 = vmatpush.bf16.msra.mxu1 %v572_v29 }
  0x2a   :  { %353 = vmatpush.bf16.msra.mxu2 %v580_v30 }
  0x2b   :  { %366 = vmatpush.bf16.msra.mxu3 %v588_v33  ;;  %328 = vmatmul.bf16.vlgmr.msra.gmra.mxu0 %v56_v36 }
  0x2c   :  { %341 = vmatmul.bf16.vlgmr.msra.gmra.mxu1 %v57_v37 }
  0x2d   :  { %354 = vmatmul.bf16.vlgmr.msra.gmra.mxu2 %v58_v38 }
  0x2e   :  { %367 = vmatmul.bf16.vlgmr.msra.gmra.mxu3 %v59_v39 }
  0xa8   :  { %v329_v41 = vpop.f32.mrf.mxu0 }
  0xa9   :  { %v342_v42 = vpop.f32.mrf.mxu1  ;;  %v330_v43 = vadd.f32 %v601_v40, %v329_v41 }
  0xab   :  { %v343_v44 = vadd.f32 %v342_v42, %v330_v43 }
  0xb0   :  { %v355_v45 = vpop.f32.mrf.mxu2  ;;  %v331_v48 = vpop.f32.mrf.mxu0 }
  0xb1   :  { %v368_v46 = vpop.f32.mrf.mxu3  ;;  %v356_v47 = vadd.f32 %v355_v45, %v343_v44  ;;  %v344_v49 = vpop.f32.mrf.mxu1 }
  0xb3   :  { %v369_v50 = vadd.f32 %v368_v46, %v356_v47 }
  0xb5   :  { %v372_v51 = vmax.f32 %v369_v50, 0.0 }
  0xb7   :  { %391 = vmatpush.xpose.msrb.mxu0 %v372_v51 }
  0xb8   :  { %v357_v53 = vpop.f32.mrf.mxu2 }
  0xb9   :  { %v370_v54 = vpop.f32.mrf.mxu3 }
  0xba   :  { %392 = vmatmul.f32.vlgmr.msrb.gmra.mxu0 %v373_v52 }
 0x137   :  { %v393_v56 = vpop.f32.mrf.mxu0 }
 0x138   :  { %v394_v57 = vadd.f32 %v393_v56, %v375_v55 }
 0x13a   :  { %v563_v58 = vmul.f32 -1.442695, %v394_v57 }
 0x13c   :  { %602 = vpow2.f32 %v563_v58 }
 0x142   :  { %v603_v59 = vpop.eup %602 }
 0x143   :  { %v399_v60 = vadd.f32 1.0, %v603_v59 }
 0x145   :  { %604 = vrcp.f32 %v399_v60  ;;  %v411_v0 = vand.u32 2147483648, %v399_v60  ;;  %v409_v2 = vand.u32 2147483647, %v399_v60  ;;  %vm405_vm1 = vweird.f32 %v399_v60 }
 0x147   :  { %v412_v4 = vor.u32 1.1754944e-38, %v411_v0  ;;  %vm410_vm4 = vcmp.eq.f32.partialorder %v409_v2, 8.507059e+37 }
 0x14b   :  { %v605_v61 = vpop.eup %604 }
 0x14c   :  { %v401_v62 = vmul.f32 %v605_v61, %v399_v60  ;;  %vm406_vm0 = vweird.f32 %v605_v61 }
 0x14d   :  { %vm407_vm2 = vmor %vm405_vm1, %vm406_vm0 }
 0x14e   :  { %v402_v63 = vsub.f32 1.0, %v401_v62 }
 0x150   :  { %v403_v1 = vmul.f32 %v605_v61, %v402_v63 }
 0x152   :  { %v404_v3 = vadd.f32 %v605_v61, %v403_v1 }
 0x154   :  { %v408_v5 = vsel %vm407_vm2, %v605_v61, %v404_v3 }
 0x155   :  { %v413_v6 = vsel %vm410_vm4, %v412_v4, %v408_v5 }
 0x156   :  { %416 = vst.msk [vmem:[#allocation8] sm:$0x1] %vm415_vm3, %v413_v6 }
 0x157   :  { %427 = dma.vmem_to_hbm [thread:$0]  %s423_s8, 16, %s425_s4, [#allocation5]  }
 0x158   :  { %682 = dma.done.wait [#allocation5], 16  }
 0x159   :  { %683 = vsyncadd [#allocation5], 4294967280 }
 0x15a   :  { %432 = vsyncpa [#allocation4], 1 }
 0x15b   :  { %433 = vsyncpa [#allocation7], 1 }
 0x15c   :  { %434 = vsyncpa [#allocation5], 1 }

</bundles_post_ra>
